<compile_context>
chip_gen: v7x
topology: tpu7x:2x2x1
jax: 0.10.0
libtpu: 0.0.40
codegen_flags: <defaults>
</compile_context>

<pallas_src>
import jax
import jax.numpy as jnp
from jax import lax
from jax.experimental import pallas as pl
from jax.experimental.pallas import tpu as pltpu

# ---------------- config (small, consistent with the forward) ----------------
B, C_IN, H, W = 2, 4, 16, 16          # input x: [2, 4, 16, 16] (NCHW)
S3_DIM = 16                           # backbone stage-3 width (f3)
S4_DIM = 32                           # cfg.MODEL.S4_DIM
RED_DIM = 16                          # cfg.MODEL.HEADS.REDUCTION_DIM
GEM_P = 3.0                           # GeneralizedMeanPooling(norm=3.0)
GEM_EPS = 1e-6
BN_EPS = 1e-5

HW = H * W                            # 256: lane-tile aligned (multiple of 128)
N = B * HW                            # 512: kept on the lane axis everywhere

# ---- single packed parameter slab (all row offsets sublane(8)-aligned) -------
_R_W1 = 0          # rows [ 0,16): w1_t (S3, C_IN) in cols [0,C_IN); b1 in col C_IN
_R_W2 = 16         # rows [16,48): w2_t (S4, S3)   in cols [0,S3);   b2 in col S3
_R_WH = 48         # rows [48,64): w_head (RED,S4) in cols [0,S4)    (BN folded in)
_R_BH = 64         # row 64:       b_head as a row in cols [0,RED)   (BN folded in)
SLAB_ROWS = 72     # 9 * 8
SLAB_COLS = 128

VMEM = pl.BlockSpec(memory_space=pltpu.MemorySpace.VMEM)


# --------------------------- fused Pallas kernel ------------------------------
def model_s1_kernel(x_ref, p_ref, out_ref):
    """Fused stand-in backbone + GeM(p=3) + (Linear with BN folded in).

    x_ref:   (B, C_IN, HW) f32   -- free reshape of NCHW, re-stacked in-kernel
    p_ref:   (72, 128)    f32    -- packed parameter slab (one DMA)
    out_ref: (B, RED_DIM) f32    -- final orientation, no wrapper transpose
    """
    bf16 = jnp.bfloat16

    # lane-dense activation layout: channels on sublanes, batch*spatial on lanes
    x = jnp.concatenate([x_ref[b] for b in range(B)], axis=-1)        # (C_IN, N)

    # static views into the packed parameter slab
    w1 = p_ref[_R_W1:_R_W1 + S3_DIM, 0:C_IN]                          # (S3, C_IN)
    b1 = p_ref[_R_W1:_R_W1 + S3_DIM, C_IN:C_IN + 1]                   # (S3, 1)
    w2 = p_ref[_R_W2:_R_W2 + S4_DIM, 0:S3_DIM]                        # (S4, S3)
    b2 = p_ref[_R_W2:_R_W2 + S4_DIM, S3_DIM:S3_DIM + 1]               # (S4, 1)
    wh = p_ref[_R_WH:_R_WH + RED_DIM, 0:S4_DIM]                       # (RED, S4)
    bh = p_ref[_R_BH:_R_BH + 1, 0:RED_DIM]                            # (1, RED)

    # --- stand-in backbone: two pointwise-conv + ReLU stages -------------------
    # MXU: bf16 operands, f32 accumulation; biases / ReLU stay f32 on the VPU.
    f3 = jnp.maximum(
        jnp.dot(w1.astype(bf16), x.astype(bf16),
                preferred_element_type=jnp.float32) + b1, 0.0)        # (S3, N) local only
    f4 = jnp.maximum(
        jnp.dot(w2.astype(bf16), f3.astype(bf16),
                preferred_element_type=jnp.float32) + b2, 0.0)        # (S4, N)

    # --- GeneralizedMeanPooling(p=3): clamp(min=eps), ^3, per-batch mean -------
    xc = jnp.maximum(f4, GEM_EPS)
    xc3 = xc * xc * xc                                                # f32 elementwise
    # per-batch spatial mean = lane-aligned static-slice XLU reductions (no pool matrix)
    pooled = jnp.concatenate(
        [jnp.sum(xc3[:, b * HW:(b + 1) * HW], axis=-1, keepdims=True)
         for b in range(B)], axis=-1) * (1.0 / HW)                    # (S4, B)
    gem = jnp.exp(jnp.log(pooled) * (1.0 / GEM_P))                    # (S4, B); pooled >= eps^3 > 0

    # --- Linear + BatchNorm1d folded into one affine, output already (B, RED) --
    feat = lax.dot_general(gem.astype(bf16), wh.astype(bf16),
                           dimension_numbers=(((0,), (1,)), ((), ())),
                           preferred_element_type=jnp.float32)        # (B, RED)
    out_ref[...] = feat + bh


# ------------------------------ wrapper ---------------------------------------
@jax.jit
def model_s1_forward(x_nchw, param_slab):
    # NCHW -> (B, C, H*W): pure reshape of contiguous memory, no copy / dispatch.
    x_b_c_hw = x_nchw.reshape(B, C_IN, HW)
    feat = pl.pallas_call(
        model_s1_kernel,
        out_shape=jax.ShapeDtypeStruct((B, RED_DIM), jnp.float32),
        in_specs=[VMEM, VMEM],
        out_specs=VMEM,
    )(x_b_c_hw, param_slab)
    return {"global_feature": feat}


def prepare_kernel_params(p):
    """Fold BN (eval mode) into the FC and pack everything into one f32 slab."""
    inv = jax.lax.rsqrt(p["bn_var"] + BN_EPS)                         # (RED,)
    s = p["bn_gamma"] * inv                                           # (RED,)
    w_head = (p["fc_w_t"] * s[None, :]).T                             # (RED, S4) BN folded
    b_head = p["fc_b"] * s + p["bn_beta"] - p["bn_mean"] * s          # (RED,)

    slab = jnp.zeros((SLAB_ROWS, SLAB_COLS), jnp.float32)
    slab = slab.at[_R_W1:_R_W1 + S3_DIM, 0:C_IN].set(p["w1"].T)       # (S3, C_IN)
    slab = slab.at[_R_W1:_R_W1 + S3_DIM, C_IN].set(p["b1"])
    slab = slab.at[_R_W2:_R_W2 + S4_DIM, 0:S3_DIM].set(p["w2"].T)     # (S4, S3)
    slab = slab.at[_R_W2:_R_W2 + S4_DIM, S3_DIM].set(p["b2"])
    slab = slab.at[_R_WH:_R_WH + RED_DIM, 0:S4_DIM].set(w_head)       # (RED, S4)
    slab = slab.at[_R_BH, 0:RED_DIM].set(b_head)                      # (RED,) as row
    return slab


# ---------------------------- reference (pure JAX, f32) ------------------------
def model_s1_reference(x_nchw, p):
    x = jnp.transpose(x_nchw, (0, 2, 3, 1)).reshape(B, HW, C_IN)
    f3 = jnp.maximum(jnp.einsum("bhc,cs->bhs", x, p["w1"]) + p["b1"], 0.0)
    f4 = jnp.maximum(jnp.einsum("bhs,sd->bhd", f3, p["w2"]) + p["b2"], 0.0)
    pooled = jnp.mean(jnp.maximum(f4, GEM_EPS) ** GEM_P, axis=1)      # (B, S4)
    gem = pooled ** (1.0 / GEM_P)
    feat = gem @ p["fc_w_t"] + p["fc_b"]                              # (B, RED)
    inv = jax.lax.rsqrt(p["bn_var"] + BN_EPS)
    return (feat - p["bn_mean"]) * inv * p["bn_gamma"] + p["bn_beta"]


# -------------------------------- main -----------------------------------------
if __name__ == "__main__":
    key = jax.random.PRNGKey(0)
    ks = jax.random.split(key, 11)

    x = jax.random.normal(ks[0], (B, C_IN, H, W), dtype=jnp.float32)

    params = {
        # stand-in backbone (pointwise convs), reference orientation
        "w1": 0.2 * jax.random.normal(ks[1], (C_IN, S3_DIM), jnp.float32),
        "b1": 0.01 * jax.random.normal(ks[2], (S3_DIM,), jnp.float32),
        "w2": 0.2 * jax.random.normal(ks[3], (S3_DIM, S4_DIM), jnp.float32),
        "b2": 0.01 * jax.random.normal(ks[4], (S4_DIM,), jnp.float32),
        # fc: nn.Linear(S4_DIM, RED_DIM) -> weight (RED, S4); stored transposed
        "fc_w_t": 0.1 * jax.random.normal(ks[5], (S4_DIM, RED_DIM), jnp.float32),
        "fc_b": 0.01 * jax.random.normal(ks[6], (RED_DIM,), jnp.float32),
        # BatchNorm1d(RED_DIM), eval mode (running stats)
        "bn_gamma": 1.0 + 0.1 * jax.random.normal(ks[7], (RED_DIM,), jnp.float32),
        "bn_beta": 0.01 * jax.random.normal(ks[8], (RED_DIM,), jnp.float32),
        "bn_mean": 0.05 * jax.random.normal(ks[9], (RED_DIM,), jnp.float32),
        "bn_var": 1.0 + 0.1 * jax.random.uniform(ks[10], (RED_DIM,), jnp.float32),
    }

    slab = prepare_kernel_params(params)

    out = model_s1_forward(x, slab)
    gf = jax.block_until_ready(out["global_feature"])

    ref = jax.block_until_ready(model_s1_reference(x, params))
    assert gf.shape == (B, RED_DIM)
    # tolerance reflects bf16 MXU operands (~2^-9 relative per input) with f32
    # accumulation; the f32 reference mirrors the module's math exactly.
    assert jnp.allclose(gf, ref, atol=2e-2, rtol=2e-2), "mismatch vs JAX reference"

    print("KERNEL_OK")
</pallas_src>

<mosaic_0001>
module attributes {stable_mosaic.version = 11 : i64} {
  func.func @model_s1_kernel(%arg0: memref<2x4x256xf32, #tpu.memory_space<vmem>>, %arg1: memref<72x128xf32, #tpu.memory_space<vmem>>, %arg2: memref<2x16xf32, #tpu.memory_space<vmem>>) attributes {dimension_semantics = [], scalar_prefetch = 0 : i64, scratch_operands = 0 : i64, tpu.core_type = #tpu.core_type<tc>} {
    %c0 = arith.constant 0 : index
    %c0_0 = arith.constant 0 : index
    %c0_1 = arith.constant 0 : index
    %0 = vector.load %arg0[%c0, %c0_0, %c0_1] : memref<2x4x256xf32, #tpu.memory_space<vmem>>, vector<1x4x256xf32>
    %1 = vector.shape_cast %0 : vector<1x4x256xf32> to vector<4x256xf32>
    %c1 = arith.constant 1 : index
    %c0_2 = arith.constant 0 : index
    %c0_3 = arith.constant 0 : index
    %2 = vector.load %arg0[%c1, %c0_2, %c0_3] : memref<2x4x256xf32, #tpu.memory_space<vmem>>, vector<1x4x256xf32>
    %3 = vector.shape_cast %2 : vector<1x4x256xf32> to vector<4x256xf32>
    %4 = tpu.concatenate %1, %3 in 1 : vector<4x256xf32>, vector<4x256xf32> -> vector<4x512xf32>
    %c0_4 = arith.constant 0 : index
    %c0_5 = arith.constant 0 : index
    %5 = vector.load %arg1[%c0_4, %c0_5] : memref<72x128xf32, #tpu.memory_space<vmem>>, vector<16x4xf32>
    %c0_6 = arith.constant 0 : index
    %c4 = arith.constant 4 : index
    %6 = vector.load %arg1[%c0_6, %c4] : memref<72x128xf32, #tpu.memory_space<vmem>>, vector<16x1xf32>
    %c16 = arith.constant 16 : index
    %c0_7 = arith.constant 0 : index
    %7 = vector.load %arg1[%c16, %c0_7] : memref<72x128xf32, #tpu.memory_space<vmem>>, vector<32x16xf32>
    %c16_8 = arith.constant 16 : index
    %c16_9 = arith.constant 16 : index
    %8 = vector.load %arg1[%c16_8, %c16_9] : memref<72x128xf32, #tpu.memory_space<vmem>>, vector<32x1xf32>
    %c48 = arith.constant 48 : index
    %c0_10 = arith.constant 0 : index
    %9 = vector.load %arg1[%c48, %c0_10] : memref<72x128xf32, #tpu.memory_space<vmem>>, vector<16x32xf32>
    %c64 = arith.constant 64 : index
    %c0_11 = arith.constant 0 : index
    %10 = vector.load %arg1[%c64, %c0_11] : memref<72x128xf32, #tpu.memory_space<vmem>>, vector<1x16xf32>
    %11 = arith.truncf %5 : vector<16x4xf32> to vector<16x4xbf16>
    %12 = arith.truncf %4 : vector<4x512xf32> to vector<4x512xbf16>
    %cst = arith.constant dense<0.000000e+00> : vector<16x512xf32>
    %13 = tpu.matmul %11, %12, %cst {dimension_numbers = #tpu.dot_dimension_numbers<[1], [0], [0], [1], [0, 0, 1, 1], [], []>} : vector<16x4xbf16>, vector<4x512xbf16>, vector<16x512xf32> -> vector<16x512xf32>
    %14 = vector.broadcast %6 : vector<16x1xf32> to vector<16x512xf32>
    %15 = arith.addf %13, %14 : vector<16x512xf32>
    %cst_12 = arith.constant 0.000000e+00 : f32
    %16 = vector.broadcast %cst_12 : f32 to vector<16x512xf32>
    %17 = arith.maximumf %15, %16 : vector<16x512xf32>
    %18 = arith.truncf %7 : vector<32x16xf32> to vector<32x16xbf16>
    %19 = arith.truncf %17 : vector<16x512xf32> to vector<16x512xbf16>
    %cst_13 = arith.constant dense<0.000000e+00> : vector<32x512xf32>
    %20 = tpu.matmul %18, %19, %cst_13 {dimension_numbers = #tpu.dot_dimension_numbers<[1], [0], [0], [1], [0, 0, 1, 1], [], []>} : vector<32x16xbf16>, vector<16x512xbf16>, vector<32x512xf32> -> vector<32x512xf32>
    %21 = vector.broadcast %8 : vector<32x1xf32> to vector<32x512xf32>
    %22 = arith.addf %20, %21 : vector<32x512xf32>
    %cst_14 = arith.constant 0.000000e+00 : f32
    %23 = vector.broadcast %cst_14 : f32 to vector<32x512xf32>
    %24 = arith.maximumf %22, %23 : vector<32x512xf32>
    %cst_15 = arith.constant 9.99999997E-7 : f32
    %25 = vector.broadcast %cst_15 : f32 to vector<32x512xf32>
    %26 = arith.maximumf %24, %25 : vector<32x512xf32>
    %27 = arith.mulf %26, %26 : vector<32x512xf32>
    %28 = arith.mulf %27, %26 : vector<32x512xf32>
    %29 = vector.extract_strided_slice %28 {offsets = [0, 0], sizes = [32, 256], strides = [1, 1]} : vector<32x512xf32> to vector<32x256xf32>
    %cst_16 = arith.constant dense<0.000000e+00> : vector<32xf32>
    %30 = vector.multi_reduction <add>, %29, %cst_16 [1] : vector<32x256xf32> to vector<32xf32>
    %31 = vector.shape_cast %30 : vector<32xf32> to vector<32x1xf32>
    %32 = vector.extract_strided_slice %28 {offsets = [0, 256], sizes = [32, 256], strides = [1, 1]} : vector<32x512xf32> to vector<32x256xf32>
    %cst_17 = arith.constant dense<0.000000e+00> : vector<32xf32>
    %33 = vector.multi_reduction <add>, %32, %cst_17 [1] : vector<32x256xf32> to vector<32xf32>
    %34 = vector.shape_cast %33 : vector<32xf32> to vector<32x1xf32>
    %35 = tpu.concatenate %31, %34 in 1 : vector<32x1xf32>, vector<32x1xf32> -> vector<32x2xf32>
    %cst_18 = arith.constant 3.906250e-03 : f32
    %36 = vector.broadcast %cst_18 : f32 to vector<32x2xf32>
    %37 = arith.mulf %35, %36 : vector<32x2xf32>
    %38 = math.log %37 : vector<32x2xf32>
    %cst_19 = arith.constant 0.333333343 : f32
    %39 = vector.broadcast %cst_19 : f32 to vector<32x2xf32>
    %40 = arith.mulf %38, %39 : vector<32x2xf32>
    %41 = math.exp %40 : vector<32x2xf32>
    %42 = arith.truncf %41 : vector<32x2xf32> to vector<32x2xbf16>
    %43 = arith.truncf %9 : vector<16x32xf32> to vector<16x32xbf16>
    %cst_20 = arith.constant dense<0.000000e+00> : vector<2x16xf32>
    %44 = tpu.matmul %42, %43, %cst_20 {dimension_numbers = #tpu.dot_dimension_numbers<[0], [1], [1], [0], [0, 1, 1, 0], [], []>} : vector<32x2xbf16>, vector<16x32xbf16>, vector<2x16xf32> -> vector<2x16xf32>
    %45 = vector.broadcast %10 : vector<1x16xf32> to vector<2x16xf32>
    %46 = arith.addf %44, %45 : vector<2x16xf32>
    %c0_21 = arith.constant 0 : index
    %c0_22 = arith.constant 0 : index
    %47 = vector.load %arg2[%c0_21, %c0_22] : memref<2x16xf32, #tpu.memory_space<vmem>>, vector<2x16xf32>
    tpu.vector_store %arg2[%c0_21, %c0_22], %46 {strides = array<i32>} : memref<2x16xf32, #tpu.memory_space<vmem>>, vector<2x16xf32>,
    return
  }
}

</mosaic_0001>

<bundles_post_ra>
// kernel: model_s1_forward.1
= control target key start
LH: loop header
LB: loop body
LE: loop exit
PB: predicated region body
PF: predicated region fallthrough
CT: control target
= control target key end

     0   :  { %vm50_vm0 = vcmask 1041408   ;;  %v569_v6 = vmov 0   ;;  %s651_s0 = inlined_call_operand.vmem [shape: f32[2,4,256], index: 0, kind: input, shape index: {}]   ;;  %s652_s1 = inlined_call_operand.vmem [shape: f32[72,128], index: 1, kind: input, shape index: {}]   ;;  %s653_s2 = inlined_call_operand.hbm [shape: f32[2,16], index: 2, kind: output, shape index: {}]  }
   0x1   :  { %v13_v0 = vld [vmem:[%s651_s0] sm:$0xff]  ;;  %v499_v1 = vld [vmem:[%s651_s0 + $0x8] sm:$0xff]  ;;  %95 = vmatprep.mubr.bf16.mxu0 %v569_v6 }
   0x2   :  { %v17_v2 = vcombine.high %v13_v0, %v13_v0  ;;  %v20_v3 = vcombine.high %v499_v1, %v499_v1  ;;  %v32_v4 = vpack.c.bf16 %v13_v0, %v13_v0  ;;  %v34_v5 = vpack.c.bf16 %v499_v1, %v499_v1 }
   0x3   :  { %7 = vsyncpa [#allocation3], 0  ;;  %138 = vmatprep.mubr.bf16.mxu1 %v569_v6  ;;  %v22_v7 = vld [vmem:[%s652_s1] sm:$0xff]  ;;  %v23_v8 = vld [vmem:[%s652_s1 + $0x8] sm:$0xff]  ;;  %v570_v13 = vmov 4   ;;  %vm46_vm1 = vcmask 31744  }
   0x4   :  { %v33_v9 = vpack.c.bf16 %v17_v2, %v17_v2  ;;  %v35_v10 = vpack.c.bf16 %v20_v3, %v20_v3  ;;  %v52_v11 = vsel %vm50_vm0, %v32_v4, 0  ;;  %v58_v12 = vsel %vm50_vm0, %v34_v5, 0  ;;  %524 = vset.pattern.permute.xlu0 %v570_v13  ;;  %v24_v15 = vld [vmem:[%s652_s1 + $0x10] sm:$0xff]  ;;  %v25_v16 = vld [vmem:[%s652_s1 + $0x18] sm:$0xff]  ;;  %v26_v18 = vld [vmem:[%s652_s1 + $0x20] sm:$0xff]  ;;  %s574_s30 = smov [#allocation2]  }
   0x5   :  { %38 = vperm.xlu0 %524, %v22_v7   ;;  %v31_v14 = vpack.c.bf16 %v23_v8, %v22_v7  ;;  %v157_v17 = vpack.c.bf16 %v25_v16, %v24_v15  ;;  %v27_v19 = vld [vmem:[%s652_s1 + $0x28] sm:$0xff]  ;;  %v571_v21 = vmov 16   ;;  %vm183_vm2 = vcmask 130048   ;;  %s491_s3 = sshll.u32 %s574_s30, 4  ;;  %s492_s3 = int_to_ptr.vmem [resolvable:$true] %s491_s3 }
   0x6   :  { %500 = vmatprep.subr.msk.bf16.mxu0 %vm50_vm0, %v33_v9  ;;  %502 = vmatprep.subr.msk.bf16.mxu1 %vm50_vm0, %v35_v10  ;;  %v158_v20 = vpack.c.bf16 %v27_v19, %v26_v18  ;;  %vm436_vm3 = vcmask 261120   ;;  %vm573_vm4 = vmmov 0   ;;  %vm384_vm5 = vcmask 7168   ;;  %s545_s4 = scalar_lea.vmem %s492_s3, 32  ;;  %p550_p1 = scmp.lt.s32.totalorder %s492_s3, %s492_s3 }
   0x7   :  { %64 = vmatpush1.bf16.msra.mxu0 %v52_v11  ;;  %107 = vmatpush1.bf16.msra.mxu1 %v58_v12  ;;  %vm483_vm6 = vcmask 123904   ;;  %p546_p0 = scmp.ne.s32.totalorder %s492_s3, %s545_s4  ;;  %p551_p2 = scmp.lt.s32.totalorder %s545_s4, %s545_s4 }
   0x8   :  { %525 = vset.pattern.permute.xlu1 %v571_v21 }
   0x9   :  { %43 = vperm.xlu0 %524, %v23_v8   ;;  %165 = vperm.xlu1 %525, %v24_v15   ;;  %p552_p3 = por %p551_p2, %p550_p1 }
   0xa   :  { %501 = vmatmul.mubr.msk.bf16.vlgmr.msra.gmra.mrb[0].mxu0 %vm46_vm1, %v31_v14  ;;  %503 = vmatmul.mubr.msk.bf16.vlgmr.msra.gmra.mrb[0].mxu1 %vm46_vm1, %v31_v14 }
   0xb   :  { %222 = vmatprep.mubr.bf16.mxu0 %v569_v6  ;;  %275 = vmatprep.mubr.bf16.mxu1 %v569_v6  ;;  %p553_p4 = pnand %p552_p3, %p546_p0 }
   0xd   :  { %526 = vset.pattern.permute.xlu0 %v571_v21  ;;  %170 = vperm.xlu1 %525, %v25_v16  }
   0xe   :  { %175 = vperm.xlu0 %526, %v26_v18  }
  0x11   :  { %180 = vperm.xlu1 %525, %v27_v19  }
  0x84   :  { %v39_v22 = vpop.permute.xlu0 %38 }
  0x88   :  { %v44_v23 = vpop.permute.xlu0 %43  ;;  %v166_v52 = vpop.permute.xlu1 %165 }
  0x8c   :  { %v171_v53 = vpop.permute.xlu1 %170 }
  0x90   :  { %v181_v21 = vpop.permute.xlu1 %180 }
  0xdd   :  { %v97_v24 = vpop.f32.mrb[0].mxu0  ;;  %v140_v25 = vpop.f32.mrb[0].mxu1 }
  0xde   :  { %v98_v26 = vadd.f32 %v97_v24, %v39_v22  ;;  %v141_v27 = vadd.f32 %v140_v25, %v39_v22  ;;  %v99_v28 = vpop.f32.mrb[1].mxu0  ;;  %v142_v29 = vpop.f32.mrb[1].mxu1 }
  0xdf   :  { %v100_v30 = vadd.f32 %v99_v28, %v39_v22  ;;  %v143_v31 = vadd.f32 %v142_v29, %v39_v22  ;;  %v101_v32 = vpop.f32.mrb[2].mxu0  ;;  %v144_v33 = vpop.f32.mrb[2].mxu1 }
  0xe0   :  { %v102_v34 = vadd.f32 %v101_v32, %v44_v23  ;;  %v145_v35 = vadd.f32 %v144_v33, %v44_v23  ;;  %v103_v36 = vpop.f32.mrb[3].mxu0  ;;  %v146_v37 = vpop.f32.mrb[3].mxu1  ;;  %v149_v40 = vmax.f32 %v98_v26, 0.0  ;;  %v151_v41 = vmax.f32 %v141_v27, 0.0 }
  0xe1   :  { %v104_v38 = vadd.f32 %v103_v36, %v44_v23  ;;  %v147_v39 = vadd.f32 %v146_v37, %v44_v23  ;;  %v150_v44 = vmax.f32 %v100_v30, 0.0  ;;  %v152_v45 = vmax.f32 %v143_v31, 0.0  ;;  %v176_v22 = vpop.permute.xlu0 %175 }
  0xe2   :  { %v153_v42 = vmax.f32 %v102_v34, 0.0  ;;  %v155_v43 = vmax.f32 %v145_v35, 0.0 }
  0xe3   :  { %v154_v46 = vmax.f32 %v104_v38, 0.0  ;;  %v156_v47 = vmax.f32 %v147_v39, 0.0 }
  0xe4   :  { %v159_v48 = vpack.c.bf16 %v153_v42, %v149_v40  ;;  %v161_v49 = vpack.c.bf16 %v155_v43, %v151_v41 }
  0xe5   :  { %v160_v50 = vpack.c.bf16 %v154_v46, %v150_v44  ;;  %v162_v51 = vpack.c.bf16 %v156_v47, %v152_v45 }
  0xe7   :  { %190 = vmatprep.subr.bf16.mxu0 %v160_v50  ;;  %243 = vmatprep.subr.bf16.mxu1 %v162_v51 }
  0xe8   :  { %191 = vmatpush1.bf16.msra.mxu0 %v159_v48  ;;  %244 = vmatpush1.bf16.msra.mxu1 %v161_v49 }
  0xeb   :  { %504 = vmatmul.mubr.msk.bf16.vlgmr.msra.gmra.mrb[4].mxu0 %vm183_vm2, %v157_v17  ;;  %506 = vmatmul.mubr.msk.bf16.vlgmr.msra.gmra.mrb[4].mxu1 %vm183_vm2, %v157_v17 }
  0xec   :  { %232 = vmatprep.mubr.bf16.mxu0 %v569_v6  ;;  %285 = vmatprep.mubr.bf16.mxu1 %v569_v6 }
  0xf3   :  { %505 = vmatmul.mubr.msk.bf16.gmra.mrb[8].mxu0 %vm183_vm2, %v158_v20  ;;  %507 = vmatmul.mubr.msk.bf16.gmra.mrb[8].mxu1 %vm183_vm2, %v158_v20 }
 0x1be   :  { %v224_v54 = vpop.f32.mrb[4].mxu0  ;;  %v277_v55 = vpop.f32.mrb[4].mxu1 }
 0x1bf   :  { %v225_v56 = vadd.f32 %v224_v54, %v166_v52  ;;  %v278_v57 = vadd.f32 %v277_v55, %v166_v52  ;;  %v226_v58 = vpop.f32.mrb[5].mxu0  ;;  %v279_v59 = vpop.f32.mrb[5].mxu1 }
 0x1c0   :  { %v227_v60 = vadd.f32 %v226_v58, %v166_v52  ;;  %v280_v61 = vadd.f32 %v279_v59, %v166_v52  ;;  %v228_v62 = vpop.f32.mrb[6].mxu0  ;;  %v281_v63 = vpop.f32.mrb[6].mxu1 }
 0x1c1   :  { %v296_v0 = vmax.f32 %v225_v56, 0.0  ;;  %v298_v1 = vmax.f32 %v278_v57, 0.0  ;;  %v229_v2 = vadd.f32 %v228_v62, %v171_v53  ;;  %v230_v3 = vpop.f32.mrb[7].mxu0  ;;  %v282_v4 = vadd.f32 %v281_v63, %v171_v53  ;;  %v283_v5 = vpop.f32.mrb[7].mxu1 }
 0x1c2   :  { %v297_v6 = vmax.f32 %v227_v60, 0.0  ;;  %v299_v7 = vmax.f32 %v280_v61, 0.0  ;;  %v231_v8 = vadd.f32 %v230_v3, %v171_v53  ;;  %v284_v9 = vadd.f32 %v283_v5, %v171_v53 }
 0x1c3   :  { %v312_v10 = vmax.f32 %v296_v0, 1e-06  ;;  %v314_v11 = vmax.f32 %v298_v1, 1e-06  ;;  %v302_v12 = vmax.f32 %v282_v4, 0.0  ;;  %v300_v13 = vmax.f32 %v229_v2, 0.0 }
 0x1c4   :  { %v313_v14 = vmax.f32 %v297_v6, 1e-06  ;;  %v315_v15 = vmax.f32 %v299_v7, 1e-06  ;;  %v301_v16 = vmax.f32 %v231_v8, 0.0  ;;  %v303_v17 = vmax.f32 %v284_v9, 0.0 }
 0x1c5   :  { %v328_v18 = vmul.f32 %v312_v10, %v312_v10  ;;  %v330_v19 = vmul.f32 %v314_v11, %v314_v11  ;;  %v318_v20 = vmax.f32 %v302_v12, 1e-06  ;;  %v316_v27 = vmax.f32 %v300_v13, 1e-06 }
 0x1c6   :  { %v331_v23 = vmul.f32 %v315_v15, %v315_v15  ;;  %v317_v24 = vmax.f32 %v301_v16, 1e-06  ;;  %v234_v25 = vpop.f32.mrb[8].mxu0  ;;  %v287_v26 = vpop.f32.mrb[8].mxu1  ;;  %v329_v28 = vmul.f32 %v313_v14, %v313_v14  ;;  %v319_v30 = vmax.f32 %v303_v17, 1e-06 }
 0x1c7   :  { %v334_v29 = vmul.f32 %v318_v20, %v318_v20  ;;  %v236_v31 = vpop.f32.mrb[9].mxu0  ;;  %v289_v32 = vpop.f32.mrb[9].mxu1  ;;  %v346_v33 = vmul.f32 %v330_v19, %v314_v11  ;;  %v235_v35 = vadd.f32 %v234_v25, %v176_v22  ;;  %v344_v45 = vmul.f32 %v328_v18, %v312_v10 }
 0x1c8   :  { %v333_v34 = vmul.f32 %v317_v24, %v317_v24  ;;  %v237_v36 = vadd.f32 %v236_v31, %v176_v22  ;;  %v290_v37 = vadd.f32 %v289_v32, %v176_v22  ;;  %v238_v38 = vpop.f32.mrb[10].mxu0  ;;  %v291_v39 = vpop.f32.mrb[10].mxu1  ;;  %v347_v44 = vmul.f32 %v331_v23, %v315_v15  ;;  %v28_v32 = vld [vmem:[%s652_s1 + $0x30] sm:$0xff] }
 0x1c9   :  { %v239_v40 = vadd.f32 %v238_v38, %v181_v21  ;;  %v292_v41 = vadd.f32 %v291_v39, %v181_v21  ;;  %v240_v42 = vpop.f32.mrb[11].mxu0  ;;  %v293_v43 = vpop.f32.mrb[11].mxu1  ;;  %v345_v53 = vmul.f32 %v329_v28, %v313_v14  ;;  %v335_v54 = vmul.f32 %v319_v30, %v319_v30 }
 0x1ca   :  { %v305_v46 = vmax.f32 %v237_v36, 0.0  ;;  %v307_v47 = vmax.f32 %v290_v37, 0.0  ;;  %v241_v48 = vadd.f32 %v240_v42, %v181_v21  ;;  %v294_v49 = vadd.f32 %v293_v43, %v181_v21 }
 0x1cb   :  { %v308_v50 = vmax.f32 %v239_v40, 0.0  ;;  %v310_v51 = vmax.f32 %v292_v41, 0.0  ;;  %v372_v52 = vadd.f32 %v347_v44, %v346_v33  ;;  %v360_v60 = vadd.f32 %v345_v53, %v344_v45  ;;  %v29_v33 = vld [vmem:[%s652_s1 + $0x38] sm:$0xff] }
 0x1cc   :  { %v321_v55 = vmax.f32 %v305_v46, 1e-06  ;;  %v309_v56 = vmax.f32 %v241_v48, 0.0  ;;  %v311_v57 = vmax.f32 %v294_v49, 0.0  ;;  %v332_v61 = vmul.f32 %v316_v27, %v316_v27 }
 0x1cd   :  { %v324_v58 = vmax.f32 %v308_v50, 1e-06  ;;  %v326_v59 = vmax.f32 %v310_v51, 1e-06  ;;  %373 = vadd.xlane.f32.xlu0 %v372_v52  ;;  %v288_v62 = vadd.f32 %v287_v26, %v176_v22  ;;  %v323_v63 = vmax.f32 %v307_v47, 1e-06  ;;  %361 = vadd.xlane.f32.xlu1 %v360_v60 }
 0x1ce   :  { %v325_v0 = vmax.f32 %v309_v56, 1e-06  ;;  %v327_v1 = vmax.f32 %v311_v57, 1e-06  ;;  %v348_v4 = vmul.f32 %v332_v61, %v316_v27  ;;  %v349_v5 = vmul.f32 %v333_v34, %v317_v24 }
 0x1cf   :  { %v340_v2 = vmul.f32 %v324_v58, %v324_v58  ;;  %v342_v3 = vmul.f32 %v326_v59, %v326_v59  ;;  %v350_v8 = vmul.f32 %v334_v29, %v318_v20  ;;  %v351_v9 = vmul.f32 %v335_v54, %v319_v30 }
 0x1d0   :  { %v341_v6 = vmul.f32 %v325_v0, %v325_v0  ;;  %v343_v7 = vmul.f32 %v327_v1, %v327_v1  ;;  %v337_v10 = vmul.f32 %v321_v55, %v321_v55  ;;  %v363_v11 = vadd.f32 %v349_v5, %v348_v4 }
 0x1d1   :  { %v304_v12 = vmax.f32 %v235_v35, 0.0  ;;  %v356_v13 = vmul.f32 %v340_v2, %v324_v58  ;;  %v339_v14 = vmul.f32 %v323_v63, %v323_v63  ;;  %v375_v15 = vadd.f32 %v351_v9, %v350_v8 }
 0x1d2   :  { %v357_v16 = vmul.f32 %v341_v6, %v325_v0  ;;  %v306_v17 = vmax.f32 %v288_v62, 0.0  ;;  %364 = vadd.xlane.f32.xlu0 %v363_v11  ;;  %v358_v19 = vmul.f32 %v342_v3, %v326_v59  ;;  %v359_v21 = vmul.f32 %v343_v7, %v327_v1 }
 0x1d3   :  { %v320_v18 = vmax.f32 %v304_v12, 1e-06  ;;  %376 = vadd.xlane.f32.xlu1 %v375_v15  ;;  %v353_v25 = vmul.f32 %v337_v10, %v321_v55  ;;  %v355_v27 = vmul.f32 %v339_v14, %v323_v63  ;;  %v572_v34 = vmov 0.0   ;;  %v508_v12 = vld [vmem:[%s652_s1 + $0x40] ss:$0 sm:$0xff] }
 0x1d4   :  { %v369_v22 = vadd.f32 %v357_v16, %v356_v13  ;;  %v322_v23 = vmax.f32 %v306_v17, 1e-06  ;;  %v381_v26 = vadd.f32 %v359_v21, %v358_v19  ;;  %512 = vmatprep.subr.bf16.mxu0 %v572_v34  ;;  %v415_v35 = vpack.c.bf16 %v29_v33, %v28_v32  ;;  %514 = vmatprep.mubr.msk.bf16.mxu0 %vm573_vm4, %v572_v34 }
 0x1d5   :  { %v336_v24 = vmul.f32 %v320_v18, %v320_v18 }
 0x1d6   :  { %v338_v20 = vmul.f32 %v322_v23, %v322_v23  ;;  %v441_v36 = vsel %vm436_vm3, %v415_v35, 0 }
 0x1d7   :  { %v352_v28 = vmul.f32 %v336_v24, %v320_v18  ;;  %370 = vadd.xlane.f32.xlu1 %v369_v22  ;;  %513 = vmatpush3.bf16.xpose.msra.mxu0 %v441_v36 }
 0x1d8   :  { %v354_v29 = vmul.f32 %v338_v20, %v322_v23 }
 0x1d9   :  { %v366_v30 = vadd.f32 %v353_v25, %v352_v28 }
 0x1da   :  { %v378_v31 = vadd.f32 %v355_v27, %v354_v29 }
 0x1db   :  { %367 = vadd.xlane.f32.xlu0 %v366_v30  ;;  %382 = vadd.xlane.f32.xlu1 %v381_v26 }
 0x1df   :  { %379 = vadd.xlane.f32.xlu0 %v378_v31 }
 0x25a   :  { %v374_v37 = vpop.xlane.xlu0 %373  ;;  %v362_v38 = vpop.xlane.xlu1 %361 }
 0x25b   :  { %v385_v39 = vsel %vm384_vm5, %v362_v38, %v374_v37 }
 0x25c   :  { %v389_v40 = vmul.f32 0.00390625, %v385_v39 }
 0x25e   :  { %529 = vlog2.f32 %v389_v40 }
 0x25f   :  { %v365_v41 = vpop.xlane.xlu0 %364 }
 0x260   :  { %v377_v42 = vpop.xlane.xlu1 %376 }
 0x261   :  { %v386_v43 = vsel %vm384_vm5, %v365_v41, %v377_v42 }
 0x262   :  { %v390_v44 = vmul.f32 0.00390625, %v386_v43 }
 0x264   :  { %531 = vlog2.f32 %v390_v44  ;;  %v371_v45 = vpop.xlane.xlu1 %370 }
 0x268   :  { %v368_v46 = vpop.xlane.xlu0 %367  ;;  %v383_v47 = vpop.xlane.xlu1 %382 }
 0x269   :  { %v530_v48 = vpop.eup %529  ;;  %v388_v49 = vsel %vm384_vm5, %v371_v45, %v383_v47 }
 0x26a   :  { %v394_v50 = vmul.f32 0.6931472, %v530_v48  ;;  %v392_v51 = vmul.f32 0.00390625, %v388_v49 }
 0x26c   :  { %v380_v52 = vpop.xlane.xlu0 %379  ;;  %v401_v53 = vmul.f32 0.33333334, %v394_v50  ;;  %533 = vlog2.f32 %v392_v51 }
 0x26d   :  { %v387_v54 = vsel %vm384_vm5, %v368_v46, %v380_v52 }
 0x26e   :  { %v391_v55 = vmul.f32 0.00390625, %v387_v54  ;;  %v532_v56 = vpop.eup %531  ;;  %v405_v58 = vmul.f32 1.442695, %v401_v53 }
 0x26f   :  { %v396_v57 = vmul.f32 0.6931472, %v532_v56 }
 0x270   :  { %535 = vlog2.f32 %v391_v55 }
 0x271   :  { %v402_v59 = vmul.f32 0.33333334, %v396_v57  ;;  %537 = vpow2.f32 %v405_v58 }
 0x273   :  { %v407_v60 = vmul.f32 1.442695, %v402_v59 }
 0x275   :  { %539 = vpow2.f32 %v407_v60 }
 0x276   :  { %v534_v61 = vpop.eup %533 }
 0x277   :  { %v400_v62 = vmul.f32 0.6931472, %v534_v61 }
 0x279   :  { %v404_v0 = vmul.f32 0.33333334, %v400_v62 }
 0x27a   :  { %v536_v63 = vpop.eup %535 }
 0x27b   :  { %v398_v1 = vmul.f32 0.6931472, %v536_v63  ;;  %v411_v2 = vmul.f32 1.442695, %v404_v0  ;;  %v538_v4 = vpop.eup %537 }
 0x27d   :  { %v403_v3 = vmul.f32 0.33333334, %v398_v1  ;;  %541 = vpow2.f32 %v411_v2 }
 0x27f   :  { %v409_v5 = vmul.f32 1.442695, %v403_v3  ;;  %v540_v6 = vpop.eup %539 }
 0x280   :  { %v413_v7 = vpack.c.bf16 %v540_v6, %v538_v4 }
 0x281   :  { %543 = vpow2.f32 %v409_v5 }
 0x282   :  { %420 = vxpose.xlu0.c.b16.start [1/2] (short) (narrow) %v413_v7, 16 }
 0x287   :  { %v542_v8 = vpop.eup %541 }
 0x28b   :  { %v544_v9 = vpop.eup %543 }
 0x28c   :  { %v414_v10 = vpack.c.bf16 %v542_v8, %v544_v9 }
 0x28e   :  { %421 = vxpose.xlu0.c.b16.end [2/2] (short) (narrow) %v414_v10, 16 }
 0x2f0   :  { %v428_v11 = vpop.trf.xlu0 }
 0x2f1   :  { %515 = vmatmul.mubr.msk.bf16.vlgmr.msra.gmra.mrb[12].mxu0 %vm436_vm3, %v428_v11 }
 0x3c4   :  { %v477_v13 = vpop.f32.mrb[12].mxu0 }
 0x3c5   :  { %v478_v14 = vadd.f32 %v508_v12, %v477_v13  ;;  %v516_v15 = vpop.f32.mrb[13].mxu0 }
 0x3c6   :  { %v480_v16 = vpop.f32.mrb[14].mxu0 }
 0x3c7   :  { %v517_v17 = vpop.f32.mrb[15].mxu0  ;;  %484 = vst.msk [vmem:[#allocation2] sm:$0x3] %vm483_vm6, %v478_v14 }
 0x3c8   :  { %556 = shalt.err (!%p553_p4)
}
 0x3c9   :  { %s557_s1 = scalar_lea.hbm %s653_s2, 32 }
 0x3ca   :  { %p558_p5 = scmp.ne.s32.totalorder %s653_s2, %s557_s1  ;;  %p561_p6 = scmp.lt.u32.totalorder %s557_s1, %s653_s2 }
 0x3cc   :  { %p563_p7 = pnand %p561_p6, %p558_p5 }
 0x3ce   :  { %566 = shalt.err (!%p563_p7)
}
 0x3cf   :  { %494 = dma.vmem_to_hbm [thread:$0]  %s492_s3, 32, %s653_s2, [#allocation3]  }
 0x3d0   :  { %567 = dma.done.wait [#allocation3], 32  }
 0x3d1   :  { %568 = vsyncadd [#allocation3], 4294967264 }
 0x3d2   :  { %498 = vsyncpa [#allocation3], 1 }

</bundles_post_ra>
